<compile_context>
chip_gen: v7x
topology: tpu7x:2x2x1
jax: 0.10.0
libtpu: 0.0.40
codegen_flags: <defaults>
</compile_context>

<pallas_src>
import math
import jax
import jax.numpy as jnp
from jax.experimental import pallas as pl
from jax.experimental.pallas import tpu as pltpu

NEG_SLOPE = 0.01   # nn.LeakyReLU() default
LANE = 128         # TPU lane width
SUBLANE = 8        # TPU sublane count (f32)


def _leaky_relu(x):
    return jnp.where(x > 0, x, NEG_SLOPE * x)


def dqn_kernel(x_ref, w_ref, out_ref):
    """x_ref: [B_pad, 128] bf16 (state | 1.0 | zeros), w_ref: [3, 128, 128] bf16 packed
    bias-augmented weights, out_ref: [B_pad, 128] f32 (actions in cols 0..n_actions-1)."""
    x = x_ref[...]
    # Layer 1: MXU matmul in bf16, accumulate f32; bias is row `input_dim` of w_ref[0],
    # multiplied by the ones-column baked into x.  LeakyReLU stays in f32.
    h1 = _leaky_relu(jnp.dot(x, w_ref[0], preferred_element_type=jnp.float32))
    # Column `fc1_dims` of h1 is exactly 1.0 (carried by w_ref[0]), so layer 2's bias rides
    # the same augmented trick.
    h2 = _leaky_relu(jnp.dot(h1.astype(jnp.bfloat16), w_ref[1],
                             preferred_element_type=jnp.float32))
    # TODO(synk): dropout=True branch (nn.Dropout(0.05) at forward time) is intentionally
    # not implemented; this reproduces the dropout=False forward path.
    out_ref[...] = jnp.dot(h2.astype(jnp.bfloat16), w_ref[2],
                           preferred_element_type=jnp.float32)


def deep_q_network_forward(state, packed):
    """state: [B, input_dim] float32. packed: dict from pack_params()."""
    w_slab = packed["w_slab"]
    input_dim = packed["input_dim"]
    n_actions = packed["n_actions"]
    B = state.shape[0]
    B_pad = ((B + SUBLANE - 1) // SUBLANE) * SUBLANE   # keep sublane-aligned tiles

    # Lane-dense, sublane-aligned input slab: [state | 1.0 | zeros], cast to bf16 for MXU.
    x_pad = jnp.zeros((B_pad, LANE), jnp.float32)
    x_pad = x_pad.at[:B, :input_dim].set(state)
    x_pad = x_pad.at[:B, input_dim].set(1.0)
    x_pad = x_pad.astype(jnp.bfloat16)

    flops = 2 * B_pad * LANE * LANE * 3
    bytes_accessed = x_pad.size * 2 + w_slab.size * 2 + B_pad * LANE * 4

    vmem = pl.BlockSpec(memory_space=pltpu.MemorySpace.VMEM)
    out = pl.pallas_call(
        dqn_kernel,
        out_shape=jax.ShapeDtypeStruct((B_pad, LANE), jnp.float32),
        in_specs=[vmem, vmem],
        out_specs=vmem,
        cost_estimate=pl.CostEstimate(flops=flops, transcendentals=0,
                                      bytes_accessed=bytes_accessed),
    )(x_pad, w_slab)
    return out[:B, :n_actions]


def init_params(key, input_dim, fc1_dims, fc2_dims, n_actions):
    """Deterministic init mimicking torch.nn.Linear defaults (U(-1/sqrt(fan_in), +))."""
    def linear(k, fan_in, fan_out):
        kw, kb = jax.random.split(k)
        bound = 1.0 / math.sqrt(fan_in)
        w = jax.random.uniform(kw, (fan_in, fan_out), jnp.float32, -bound, bound)  # [in,out]
        b = jax.random.uniform(kb, (fan_out,), jnp.float32, -bound, bound)
        return w, b

    k1, k2, k3 = jax.random.split(key, 3)
    w1, b1 = linear(k1, input_dim, fc1_dims)
    w2, b2 = linear(k2, fc1_dims, fc2_dims)
    w3, b3 = linear(k3, fc2_dims, n_actions)
    return {"w1": w1, "b1": b1, "w2": w2, "b2": b2, "w3": w3, "b3": b3}


def pack_params(params, input_dim, fc1_dims, fc2_dims, n_actions):
    """Fold biases into 128x128 bias-augmented weights, pack into one bf16 [3,128,128] slab."""
    assert input_dim + 1 <= LANE and fc1_dims + 1 <= LANE
    assert fc2_dims + 1 <= LANE and n_actions <= LANE
    # TODO(synk): dims > 127 would need a multiple-of-128 slab per layer plus K-tiling.

    w1p = jnp.zeros((LANE, LANE), jnp.float32)
    w1p = w1p.at[:input_dim, :fc1_dims].set(params["w1"])
    w1p = w1p.at[input_dim, :fc1_dims].set(params["b1"])   # bias row (hits the ones column)
    w1p = w1p.at[input_dim, fc1_dims].set(1.0)              # carry the ones column forward

    w2p = jnp.zeros((LANE, LANE), jnp.float32)
    w2p = w2p.at[:fc1_dims, :fc2_dims].set(params["w2"])
    w2p = w2p.at[fc1_dims, :fc2_dims].set(params["b2"])
    w2p = w2p.at[fc1_dims, fc2_dims].set(1.0)

    w3p = jnp.zeros((LANE, LANE), jnp.float32)
    w3p = w3p.at[:fc2_dims, :n_actions].set(params["w3"])
    w3p = w3p.at[fc2_dims, :n_actions].set(params["b3"])

    w_slab = jnp.stack([w1p, w2p, w3p]).astype(jnp.bfloat16)   # [3, 128, 128], ~96 KB
    return {"w_slab": w_slab, "input_dim": input_dim, "n_actions": n_actions}


if __name__ == "__main__":
    # Tic-tac-toe style DQN: 9-dim board state, two hidden layers of 32, 9 actions.
    batch, input_dim, fc1_dims, fc2_dims, n_actions = 8, 9, 32, 32, 9

    key = jax.random.PRNGKey(0)
    k_params, k_state = jax.random.split(key)
    params = init_params(k_params, input_dim, fc1_dims, fc2_dims, n_actions)
    packed = pack_params(params, input_dim, fc1_dims, fc2_dims, n_actions)
    state = jax.random.normal(k_state, (batch, input_dim), jnp.float32)

    actions = deep_q_network_forward(state, packed)
    jax.block_until_ready(actions)
    assert actions.shape == (batch, n_actions)

    # Reference 1: pure-JAX replica of the exact kernel math (same bf16 slab, f32 accum).
    B_pad = ((batch + SUBLANE - 1) // SUBLANE) * SUBLANE
    x_pad = jnp.zeros((B_pad, LANE), jnp.float32)
    x_pad = x_pad.at[:batch, :input_dim].set(state)
    x_pad = x_pad.at[:batch, input_dim].set(1.0)
    xb = x_pad.astype(jnp.bfloat16)
    w = packed["w_slab"]
    h1 = _leaky_relu(jnp.dot(xb, w[0], preferred_element_type=jnp.float32))
    h2 = _leaky_relu(jnp.dot(h1.astype(jnp.bfloat16), w[1],
                             preferred_element_type=jnp.float32))
    expected_bf16 = jnp.dot(h2.astype(jnp.bfloat16), w[2],
                            preferred_element_type=jnp.float32)[:batch, :n_actions]

    # Reference 2: full-f32 PyTorch-semantics forward (dropout=False path).
    def ref_f32(x, p):
        a1 = _leaky_relu(x @ p["w1"] + p["b1"])
        a2 = _leaky_relu(a1 @ p["w2"] + p["b2"])
        return a2 @ p["w3"] + p["b3"]

    expected_f32 = ref_f32(state, params)

    assert jnp.allclose(actions, expected_bf16, atol=2e-3, rtol=2e-3)
    assert jnp.allclose(actions, expected_f32, atol=5e-2, rtol=5e-2)
    print("KERNEL_OK")
</pallas_src>

<mosaic_0001>
module attributes {stable_mosaic.version = 11 : i64} {
  func.func @dqn_kernel(%arg0: memref<8x128xbf16, #tpu.memory_space<vmem>>, %arg1: memref<3x128x128xbf16, #tpu.memory_space<vmem>>, %arg2: memref<8x128xf32, #tpu.memory_space<vmem>>) attributes {dimension_semantics = [], scalar_prefetch = 0 : i64, scratch_operands = 0 : i64, tpu.core_type = #tpu.core_type<tc>} {
    %c0 = arith.constant 0 : index
    %c0_0 = arith.constant 0 : index
    %0 = vector.load %arg0[%c0, %c0_0] : memref<8x128xbf16, #tpu.memory_space<vmem>>, vector<8x128xbf16>
    %c0_1 = arith.constant 0 : index
    %c0_2 = arith.constant 0 : index
    %c0_3 = arith.constant 0 : index
    %1 = vector.load %arg1[%c0_1, %c0_2, %c0_3] : memref<3x128x128xbf16, #tpu.memory_space<vmem>>, vector<1x128x128xbf16>
    %2 = vector.shape_cast %1 : vector<1x128x128xbf16> to vector<128x128xbf16>
    %cst = arith.constant dense<0.000000e+00> : vector<8x128xf32>
    %3 = tpu.matmul %0, %2, %cst {dimension_numbers = #tpu.dot_dimension_numbers<[1], [0], [0], [1], [0, 0, 1, 1], [], []>} : vector<8x128xbf16>, vector<128x128xbf16>, vector<8x128xf32> -> vector<8x128xf32>
    %cst_4 = arith.constant 0.000000e+00 : f32
    %4 = vector.broadcast %cst_4 : f32 to vector<8x128xf32>
    %5 = arith.cmpf ogt, %3, %4 : vector<8x128xf32>
    %cst_5 = arith.constant 0.00999999977 : f32
    %6 = vector.broadcast %cst_5 : f32 to vector<8x128xf32>
    %7 = arith.mulf %6, %3 : vector<8x128xf32>
    %8 = arith.select %5, %3, %7 : vector<8x128xi1>, vector<8x128xf32>
    %9 = arith.truncf %8 : vector<8x128xf32> to vector<8x128xbf16>
    %c1 = arith.constant 1 : index
    %c0_6 = arith.constant 0 : index
    %c0_7 = arith.constant 0 : index
    %10 = vector.load %arg1[%c1, %c0_6, %c0_7] : memref<3x128x128xbf16, #tpu.memory_space<vmem>>, vector<1x128x128xbf16>
    %11 = vector.shape_cast %10 : vector<1x128x128xbf16> to vector<128x128xbf16>
    %cst_8 = arith.constant dense<0.000000e+00> : vector<8x128xf32>
    %12 = tpu.matmul %9, %11, %cst_8 {dimension_numbers = #tpu.dot_dimension_numbers<[1], [0], [0], [1], [0, 0, 1, 1], [], []>} : vector<8x128xbf16>, vector<128x128xbf16>, vector<8x128xf32> -> vector<8x128xf32>
    %cst_9 = arith.constant 0.000000e+00 : f32
    %13 = vector.broadcast %cst_9 : f32 to vector<8x128xf32>
    %14 = arith.cmpf ogt, %12, %13 : vector<8x128xf32>
    %cst_10 = arith.constant 0.00999999977 : f32
    %15 = vector.broadcast %cst_10 : f32 to vector<8x128xf32>
    %16 = arith.mulf %15, %12 : vector<8x128xf32>
    %17 = arith.select %14, %12, %16 : vector<8x128xi1>, vector<8x128xf32>
    %18 = arith.truncf %17 : vector<8x128xf32> to vector<8x128xbf16>
    %c2 = arith.constant 2 : index
    %c0_11 = arith.constant 0 : index
    %c0_12 = arith.constant 0 : index
    %19 = vector.load %arg1[%c2, %c0_11, %c0_12] : memref<3x128x128xbf16, #tpu.memory_space<vmem>>, vector<1x128x128xbf16>
    %20 = vector.shape_cast %19 : vector<1x128x128xbf16> to vector<128x128xbf16>
    %cst_13 = arith.constant dense<0.000000e+00> : vector<8x128xf32>
    %21 = tpu.matmul %18, %20, %cst_13 {dimension_numbers = #tpu.dot_dimension_numbers<[1], [0], [0], [1], [0, 0, 1, 1], [], []>} : vector<8x128xbf16>, vector<128x128xbf16>, vector<8x128xf32> -> vector<8x128xf32>
    %c0_14 = arith.constant 0 : index
    %c0_15 = arith.constant 0 : index
    %22 = vector.load %arg2[%c0_14, %c0_15] : memref<8x128xf32, #tpu.memory_space<vmem>>, vector<8x128xf32>
    tpu.vector_store %arg2[%c0_14, %c0_15], %21 {strides = array<i32>} : memref<8x128xf32, #tpu.memory_space<vmem>>, vector<8x128xf32>,
    return
  }
}

</mosaic_0001>

<bundles_post_ra>
// kernel: tpu_custom_call.1
= control target key start
LH: loop header
LB: loop body
LE: loop exit
PB: predicated region body
PF: predicated region fallthrough
CT: control target
= control target key end

     0   :  { %7 = vsyncpa [#allocation3], 0  ;;  %s688_s0 = inlined_call_operand.hbm [shape: bf16[8,128], index: 0, kind: input, shape index: {}]   ;;  %s689_s1 = inlined_call_operand.hbm [shape: bf16[3,128,128], index: 1, kind: input, shape index: {}]   ;;  %s690_s2 = inlined_call_operand.hbm [shape: f32[8,128], index: 2, kind: output, shape index: {}]  }
   0x1   :  { %8 = vsyncpa [#allocation6], 0 }
   0x2   :  { %9 = vsyncpa [#allocation4], 0  ;;  %s593_s9 = smov [#allocation2]   ;;  %s594_s11 = smov [#allocation5]  }
   0x3   :  { %s16_s10 = sshll.u32 %s593_s9, 4  ;;  %s25_s12 = sshll.u32 %s594_s11, 4  ;;  %s17_s10 = int_to_ptr.vmem [resolvable:$true] %s16_s10  ;;  %s615_s12 = int_to_ptr.vmem [resolvable:$true] %s25_s12 }
   0x4   :  { %s521_s15 = scalar_lea.hbm %s688_s0, 64 }
   0x5   :  { %p522_p0 = scmp.ne.s32.totalorder %s688_s0, %s521_s15  ;;  %p525_p1 = scmp.lt.u32.totalorder %s521_s15, %s688_s0 }
   0x7   :  { %p527_p2 = pnand %p525_p1, %p522_p0 }
   0x9   :  { %530 = shalt.err (!%p527_p2)
}
   0xa   :  { %s531_s20 = scalar_lea.vmem %s17_s10, 64  ;;  %p536_p4 = scmp.lt.s32.totalorder %s17_s10, %s17_s10 }
   0xb   :  { %p532_p3 = scmp.ne.s32.totalorder %s17_s10, %s531_s20  ;;  %p537_p5 = scmp.lt.s32.totalorder %s531_s20, %s531_s20 }
   0xd   :  { %p538_p6 = por %p537_p5, %p536_p4 }
   0xf   :  { %p539_p7 = pnand %p538_p6, %p532_p3 }
  0x11   :  { %542 = shalt.err (!%p539_p7)
}
  0x12   :  { %19 = dma.hbm_to_vmem [thread:$0]  %s688_s0, 64, %s17_s10, [#allocation3]  }
  0x13   :  { %s543_s25 = scalar_lea.hbm %s689_s1, 3072 }
  0x14   :  { %p544_p8 = scmp.ne.s32.totalorder %s689_s1, %s543_s25  ;;  %p547_p9 = scmp.lt.u32.totalorder %s543_s25, %s689_s1 }
  0x16   :  { %p549_p10 = pnand %p547_p9, %p544_p8 }
  0x18   :  { %552 = shalt.err (!%p549_p10)
}
  0x19   :  { %s553_s30 = scalar_lea.vmem %s615_s12, 3072  ;;  %p558_p12 = scmp.lt.s32.totalorder %s615_s12, %s615_s12 }
  0x1a   :  { %p554_p11 = scmp.ne.s32.totalorder %s615_s12, %s553_s30  ;;  %p559_p13 = scmp.lt.s32.totalorder %s553_s30, %s553_s30 }
  0x1c   :  { %p560_p0 = por %p559_p13, %p558_p12 }
  0x1e   :  { %p561_p1 = pnand %p560_p0, %p554_p11 }
  0x20   :  { %564 = shalt.err (!%p561_p1)
}
  0x21   :  { %s595_s0 = smov 64   ;;  %s596_s3 = smov 4  }
  0x22   :  { %31 = dma.hbm_to_vmem [thread:$0]  %s689_s1, 3072, %s615_s12, [#allocation6], %s595_s0, %s595_s0, %s596_s3  }
  0x23   :  { %587 = dma.done.wait [#allocation3], 64  }
  0x24   :  { %588 = vsyncadd [#allocation3], 4294967232 }
  0x25   :  { %589 = dma.done.wait [#allocation6], 3072  }
  0x26   :  { %590 = vsyncadd [#allocation6], 4294964224  ;;  %v597_v0 = vmov 0.0   ;;  %vm598_vm0 = vmmov 0   ;;  %v497_v1 = vld [vmem:[#allocation5] sm:$0xff]   ;;  %v498_v2 = vld [vmem:[#allocation5 + $0x8] sm:$0xff]  }
  0x27   :  { %430 = vmatprep.subr.bf16.mxu0 %v597_v0  ;;  %446 = vmatprep.mubr.msk.bf16.mxu0 %vm598_vm0, %v597_v0  ;;  %v499_v3 = vld [vmem:[#allocation5 + $0x10] sm:$0xff]   ;;  %v505_v4 = vld [vmem:[#allocation5 + $0x40] sm:$0xff]   ;;  %v500_v5 = vld [vmem:[#allocation5 + $0x18] sm:$0xff]   ;;  %s599_s1 = smov [#allocation7]  }
  0x28   :  { %450 = vmatprep.subr.bf16.mxu1 %v597_v0  ;;  %466 = vmatprep.mubr.msk.bf16.mxu1 %vm598_vm0, %v597_v0  ;;  %v506_v6 = vld [vmem:[#allocation5 + $0x48] sm:$0xff]   ;;  %v501_v7 = vld [vmem:[#allocation5 + $0x20] sm:$0xff]   ;;  %v507_v8 = vld [vmem:[#allocation5 + $0x50] sm:$0xff]   ;;  %s369_s6 = sshll.u32 %s599_s1, 4  ;;  %s370_s6 = int_to_ptr.vmem [resolvable:$true] %s369_s6 }
  0x29   :  { %431 = vmatpush3.bf16.msra.mxu0 %v497_v1  ;;  %451 = vmatpush3.bf16.msra.mxu1 %v505_v4  ;;  %v502_v9 = vld [vmem:[#allocation5 + $0x28] sm:$0xff]   ;;  %v508_v10 = vld [vmem:[#allocation5 + $0x58] sm:$0xff]   ;;  %v503_v11 = vld [vmem:[#allocation5 + $0x30] sm:$0xff]   ;;  %s565_s7 = scalar_lea.vmem %s370_s6, 128  ;;  %p570_p3 = scmp.lt.s32.totalorder %s370_s6, %s370_s6 }
  0x2a   :  { %432 = vmatprep.subr.bf16.mxu0 %v597_v0  ;;  %452 = vmatprep.subr.bf16.mxu1 %v597_v0  ;;  %v509_v12 = vld [vmem:[#allocation5 + $0x60] sm:$0xff]   ;;  %v504_v13 = vld [vmem:[#allocation5 + $0x38] sm:$0xff]   ;;  %v510_v14 = vld [vmem:[#allocation5 + $0x68] sm:$0xff]   ;;  %p566_p2 = scmp.ne.s32.totalorder %s370_s6, %s565_s7  ;;  %p571_p4 = scmp.lt.s32.totalorder %s565_s7, %s565_s7 }
  0x2b   :  { %v39_v15 = vld [vmem:[#allocation2] sm:$0xf]  ;;  %v511_v16 = vld [vmem:[#allocation5 + $0x70] sm:$0xff]   ;;  %v513_v18 = vld [vmem:[#allocation5 + $0x80] sm:$0xff]  }
  0x2c   :  { %v512_v17 = vld [vmem:[#allocation5 + $0x78] sm:$0xff]   ;;  %v514_v19 = vld [vmem:[#allocation5 + $0x88] sm:$0xff]   ;;  %v515_v20 = vld [vmem:[#allocation5 + $0x90] sm:$0xff]   ;;  %p572_p5 = por %p571_p4, %p570_p3 }
  0x2d   :  { %433 = vmatpush3.bf16.msra.mxu0 %v498_v2  ;;  %453 = vmatpush3.bf16.msra.mxu1 %v506_v6  ;;  %v516_v21 = vld [vmem:[#allocation5 + $0x98] sm:$0xff]   ;;  %v517_v22 = vld [vmem:[#allocation5 + $0xa0] sm:$0xff]   ;;  %v518_v23 = vld [vmem:[#allocation5 + $0xa8] sm:$0xff]  }
  0x2e   :  { %434 = vmatprep.subr.bf16.mxu0 %v597_v0  ;;  %454 = vmatprep.subr.bf16.mxu1 %v597_v0  ;;  %v519_v24 = vld [vmem:[#allocation5 + $0xb0] sm:$0xff]   ;;  %v520_v32 = vld [vmem:[#allocation5 + $0xb8] sm:$0xff]   ;;  %p573_p6 = pnand %p572_p5, %p566_p2 }
  0x31   :  { %435 = vmatpush3.bf16.msra.mxu0 %v499_v3  ;;  %455 = vmatpush3.bf16.msra.mxu1 %v507_v8 }
  0x32   :  { %436 = vmatprep.subr.bf16.mxu0 %v597_v0  ;;  %456 = vmatprep.subr.bf16.mxu1 %v597_v0 }
  0x35   :  { %437 = vmatpush3.bf16.msra.mxu0 %v500_v5  ;;  %457 = vmatpush3.bf16.msra.mxu1 %v508_v10 }
  0x36   :  { %438 = vmatprep.subr.bf16.mxu0 %v597_v0  ;;  %458 = vmatprep.subr.bf16.mxu1 %v597_v0 }
  0x39   :  { %439 = vmatpush3.bf16.msra.mxu0 %v501_v7  ;;  %459 = vmatpush3.bf16.msra.mxu1 %v509_v12 }
  0x3a   :  { %440 = vmatprep.subr.bf16.mxu0 %v597_v0  ;;  %460 = vmatprep.subr.bf16.mxu1 %v597_v0 }
  0x3d   :  { %441 = vmatpush3.bf16.msra.mxu0 %v502_v9  ;;  %461 = vmatpush3.bf16.msra.mxu1 %v510_v14 }
  0x3e   :  { %442 = vmatprep.subr.bf16.mxu0 %v597_v0  ;;  %462 = vmatprep.subr.bf16.mxu1 %v597_v0 }
  0x41   :  { %443 = vmatpush3.bf16.msra.mxu0 %v503_v11  ;;  %463 = vmatpush3.bf16.msra.mxu1 %v511_v16 }
  0x42   :  { %444 = vmatprep.subr.bf16.mxu0 %v597_v0  ;;  %464 = vmatprep.subr.bf16.mxu1 %v597_v0 }
  0x45   :  { %445 = vmatpush3.bf16.msra.mxu0 %v504_v13  ;;  %465 = vmatpush3.bf16.msra.mxu1 %v512_v17 }
  0x46   :  { %470 = vmatprep.subr.bf16.mxu0 %v597_v0 }
  0x48   :  { %447 = vmatmul.mubr.bf16.vlgmr.msra.gmra.mrb[0].mxu0 %v39_v15 }
  0x49   :  { %486 = vmatprep.mubr.msk.bf16.mxu0 %vm598_vm0, %v597_v0  ;;  %471 = vmatpush3.bf16.msra.mxu0 %v513_v18 }
  0x4a   :  { %472 = vmatprep.subr.bf16.mxu0 %v597_v0 }
  0x4d   :  { %473 = vmatpush3.bf16.msra.mxu0 %v514_v19 }
  0x4e   :  { %474 = vmatprep.subr.bf16.mxu0 %v597_v0 }
  0x51   :  { %475 = vmatpush3.bf16.msra.mxu0 %v515_v20 }
  0x52   :  { %476 = vmatprep.subr.bf16.mxu0 %v597_v0 }
  0x55   :  { %477 = vmatpush3.bf16.msra.mxu0 %v516_v21 }
  0x56   :  { %478 = vmatprep.subr.bf16.mxu0 %v597_v0 }
  0x59   :  { %479 = vmatpush3.bf16.msra.mxu0 %v517_v22 }
  0x5a   :  { %480 = vmatprep.subr.bf16.mxu0 %v597_v0 }
  0x5d   :  { %481 = vmatpush3.bf16.msra.mxu0 %v518_v23 }
  0x5e   :  { %482 = vmatprep.subr.bf16.mxu0 %v597_v0 }
  0x61   :  { %483 = vmatpush3.bf16.msra.mxu0 %v519_v24 }
  0x62   :  { %484 = vmatprep.subr.bf16.mxu0 %v597_v0 }
  0x65   :  { %485 = vmatpush3.bf16.msra.mxu0 %v520_v32 }
 0x11b   :  { %v138_v25 = vpop.f32.mrb[0].mxu0 }
 0x11c   :  { %vm144_vm1 = vcmp.gt.f32.partialorder %v138_v25, 0.0  ;;  %v145_v26 = vmul.f32 0.01, %v138_v25  ;;  %v448_v27 = vpop.f32.mrb[1].mxu0 }
 0x11d   :  { %v141_v28 = vpop.f32.mrb[2].mxu0 }
 0x11e   :  { %v146_v29 = vsel %vm144_vm1, %v138_v25, %v145_v26  ;;  %v449_v30 = vpop.f32.mrb[3].mxu0 }
 0x11f   :  { %v147_v31 = vpack.c.bf16 %v146_v29, %v146_v29 }
 0x121   :  { %467 = vmatmul.mubr.bf16.vlgmr.msra.gmra.mrb[0].mxu1 %v147_v31 }
 0x1f4   :  { %v247_v33 = vpop.f32.mrb[0].mxu1 }
 0x1f5   :  { %vm253_vm2 = vcmp.gt.f32.partialorder %v247_v33, 0.0  ;;  %v254_v34 = vmul.f32 0.01, %v247_v33  ;;  %v468_v35 = vpop.f32.mrb[1].mxu1 }
 0x1f6   :  { %v250_v36 = vpop.f32.mrb[2].mxu1 }
 0x1f7   :  { %v255_v37 = vsel %vm253_vm2, %v247_v33, %v254_v34  ;;  %v469_v38 = vpop.f32.mrb[3].mxu1 }
 0x1f8   :  { %v256_v39 = vpack.c.bf16 %v255_v37, %v255_v37 }
 0x1fa   :  { %487 = vmatmul.mubr.bf16.vlgmr.msra.gmra.mrb[4].mxu0 %v256_v39 }
 0x2cd   :  { %v356_v40 = vpop.f32.mrb[4].mxu0 }
 0x2ce   :  { %362 = vst [vmem:[#allocation7] sm:$0xff] %v356_v40  ;;  %v488_v41 = vpop.f32.mrb[5].mxu0 }
 0x2cf   :  { %v359_v42 = vpop.f32.mrb[6].mxu0 }
 0x2d0   :  { %576 = shalt.err (!%p573_p6)
}
 0x2d1   :  { %s577_s10 = scalar_lea.hbm %s690_s2, 128 }
 0x2d2   :  { %p578_p7 = scmp.ne.s32.totalorder %s690_s2, %s577_s10  ;;  %p581_p8 = scmp.lt.u32.totalorder %s577_s10, %s690_s2 }
 0x2d4   :  { %p583_p9 = pnand %p581_p8, %p578_p7 }
 0x2d6   :  { %586 = shalt.err (!%p583_p9)
}
 0x2d7   :  { %372 = dma.vmem_to_hbm [thread:$0]  %s370_s6, 128, %s690_s2, [#allocation4]   ;;  %v489_v43 = vpop.f32.mrb[7].mxu0 }
 0x2d8   :  { %591 = dma.done.wait [#allocation4], 128  }
 0x2d9   :  { %592 = vsyncadd [#allocation4], 4294967168 }
 0x2da   :  { %376 = vsyncpa [#allocation3], 1 }
 0x2db   :  { %377 = vsyncpa [#allocation6], 1 }
 0x2dc   :  { %378 = vsyncpa [#allocation4], 1 }

</bundles_post_ra>
